<compile_context>
chip_gen: v6e
topology: v6e:2x2x1
jax: 0.10.0
libtpu: 0.0.40
codegen_flags: <defaults>
</compile_context>

<pallas_src>
import functools

import jax
import jax.numpy as jnp
import numpy as np
from jax.experimental import pallas as pl
from jax.experimental.pallas import tpu as pltpu


def _round_up(n, m):
    return ((n + m - 1) // m) * m


def _padded_dims(n):
    """Node padding and row/col tile size (multiple of 128, capped at 512)."""
    n_pad = _round_up(n, 128)
    tile = min(512, n_pad)
    n_pad = _round_up(n_pad, tile)
    return n_pad, tile


# ---------------------------------------------------------------------------
# Kernel 1: per-layer projection  XW = X @ W_fold   (bf16 in, f32 acc, bf16 out)
# ---------------------------------------------------------------------------
def _project_kernel(x_ref, w_ref, o_ref):
    o_ref[...] = jnp.dot(x_ref[...], w_ref[...],
                         preferred_element_type=jnp.float32).astype(o_ref.dtype)


def _project(x_bf16, w_bf16, n_pad, tile, c_in_pad, c_out_pad):
    return pl.pallas_call(
        _project_kernel,
        out_shape=jax.ShapeDtypeStruct((n_pad, c_out_pad), jnp.bfloat16),
        grid=(n_pad // tile,),
        in_specs=[
            pl.BlockSpec((tile, c_in_pad), lambda i: (i, 0)),
            pl.BlockSpec((c_in_pad, c_out_pad), lambda i: (0, 0)),
        ],
        out_specs=pl.BlockSpec((tile, c_out_pad), lambda i: (i, 0)),
        compiler_params=pltpu.CompilerParams(
            dimension_semantics=("parallel",),
            vmem_limit_bytes=32 * 1024 * 1024),
    )(x_bf16, w_bf16)


# ---------------------------------------------------------------------------
# Kernel 2: tiled aggregation  H = A_hat @ XW  + shift (+ residual) (+ relu)
# ---------------------------------------------------------------------------
def _agg_kernel(a_ref, xw_ref, shift_ref, *rest, use_residual, apply_relu):
    if use_residual:
        xres_ref, o_ref, acc_ref = rest
    else:
        o_ref, acc_ref = rest
    k = pl.program_id(1)

    @pl.when(k == 0)
    def _():
        acc_ref[...] = jnp.zeros_like(acc_ref)

    acc_ref[...] += jnp.dot(a_ref[...], xw_ref[...],
                            preferred_element_type=jnp.float32)

    @pl.when(k == pl.num_programs(1) - 1)
    def _():
        h = acc_ref[...] + shift_ref[...]
        if use_residual:
            h = h + xres_ref[...]
        if apply_relu:
            h = jnp.maximum(h, 0.0)
        o_ref[...] = h.astype(o_ref.dtype)


def _aggregate(a_bf16, xw_bf16, shift, x_res, n_pad, tile, c_out_pad,
               use_residual, apply_relu):
    kernel = functools.partial(
        _agg_kernel, use_residual=use_residual, apply_relu=apply_relu)

    in_specs = [
        pl.BlockSpec((tile, tile), lambda i, k: (i, k)),        # A_hat tile
        pl.BlockSpec((tile, c_out_pad), lambda i, k: (k, 0)),   # XW k-slab
        pl.BlockSpec((1, c_out_pad), lambda i, k: (0, 0)),      # folded shift
    ]
    args = [a_bf16, xw_bf16, shift]
    if use_residual:
        in_specs.append(pl.BlockSpec((tile, c_out_pad), lambda i, k: (i, 0)))
        args.append(x_res)

    return pl.pallas_call(
        kernel,
        out_shape=jax.ShapeDtypeStruct((n_pad, c_out_pad), jnp.float32),
        grid=(n_pad // tile, n_pad // tile),
        in_specs=in_specs,
        out_specs=pl.BlockSpec((tile, c_out_pad), lambda i, k: (i, 0)),
        scratch_shapes=[pltpu.VMEM((tile, c_out_pad), jnp.float32)],
        compiler_params=pltpu.CompilerParams(
            dimension_semantics=("parallel", "arbitrary"),
            vmem_limit_bytes=32 * 1024 * 1024),
    )(*args)


# ---------------------------------------------------------------------------
# One GCNLayer (GCNConv + BatchNorm1d(eval) + residual + relu), Pallas-backed
# ---------------------------------------------------------------------------
def gcn_layer_pallas(a_hat_bf16, x, w, b, gamma, beta, run_mean, run_var,
                     *, n_pad, tile, use_residual, apply_relu, eps=1e-5):
    n, c_in = x.shape
    c_out = w.shape[1]
    c_in_pad = _round_up(c_in, 128)
    c_out_pad = _round_up(c_out, 128)

    # Fold GCNConv bias + eval-mode BatchNorm1d into the projection weights.
    scale = gamma * jax.lax.rsqrt(run_var + eps)
    w_fold = w * scale[None, :]
    shift = ((b - run_mean) * scale + beta).reshape(1, c_out)

    # Zero-pad to lane-dense / tile-aligned shapes.
    x_pad = jnp.pad(x, ((0, n_pad - n), (0, c_in_pad - c_in)))
    w_pad = jnp.pad(w_fold, ((0, c_in_pad - c_in), (0, c_out_pad - c_out)))
    shift_pad = jnp.pad(shift, ((0, 0), (0, c_out_pad - c_out)))

    # Projection done once per layer (hoisted out of the row-tiled kernel).
    xw = _project(x_pad.astype(jnp.bfloat16), w_pad.astype(jnp.bfloat16),
                  n_pad, tile, c_in_pad, c_out_pad)

    # Tiled sparse->dense aggregation + fused epilogue.
    x_res = x_pad if use_residual else None   # c_in_pad == c_out_pad here
    out = _aggregate(a_hat_bf16, xw, shift_pad, x_res, n_pad, tile,
                     c_out_pad, use_residual, apply_relu)
    return out[:n, :c_out]


# ---------------------------------------------------------------------------
# Glue: dense GCN-normalized adjacency (matches PyG gcn_norm, add_self_loops)
# ---------------------------------------------------------------------------
def build_normalized_adjacency(edge_index, edge_weight, num_nodes, n_pad):
    src = edge_index[0]
    dst = edge_index[1]
    if edge_weight is None:
        edge_weight = jnp.ones(src.shape[0], dtype=jnp.float32)
    loop_idx = jnp.arange(num_nodes, dtype=src.dtype)
    src = jnp.concatenate([src, loop_idx])
    dst = jnp.concatenate([dst, loop_idx])
    ew = jnp.concatenate([edge_weight,
                          jnp.ones(num_nodes, dtype=jnp.float32)])
    deg = jnp.zeros((num_nodes,), jnp.float32).at[dst].add(ew)
    dinv = jnp.where(deg > 0, jax.lax.rsqrt(deg), 0.0)
    norm = dinv[src] * ew * dinv[dst]
    # out[dst] += norm * x[src]  ==>  A_hat[dst, src] += norm
    a_hat = jnp.zeros((num_nodes, num_nodes), jnp.float32).at[dst, src].add(norm)
    a_hat = jnp.pad(a_hat, ((0, n_pad - num_nodes), (0, n_pad - num_nodes)))
    return a_hat.astype(jnp.bfloat16)


# ---------------------------------------------------------------------------
# GCNBlock forward (inference: dropout identity, BN uses running stats)
# ---------------------------------------------------------------------------
def gcn_block_forward(x, edge_index, edge_weight, params):
    num_nodes = x.shape[0]
    n_pad, tile = _padded_dims(num_nodes)
    a_hat = build_normalized_adjacency(edge_index, edge_weight, num_nodes, n_pad)
    n_layers = len(params)
    for i, p in enumerate(params):
        in_c = x.shape[1]
        out_c = p["w"].shape[1]
        use_res = (i > 0) and (in_c == out_c)   # first layer: use_residual=False
        apply_relu = i < n_layers - 1
        x = gcn_layer_pallas(
            a_hat, x, p["w"], p["b"], p["gamma"], p["beta"],
            p["running_mean"], p["running_var"],
            n_pad=n_pad, tile=tile,
            use_residual=use_res, apply_relu=apply_relu)
        # TODO(synk): F.dropout is identity in eval mode; not implemented.
    return x


# ---------------------------------------------------------------------------
# Pure-JAX references for silent correctness checks
# ---------------------------------------------------------------------------
def gcn_block_reference_f32(x, a_hat_f32, params, eps=1e-5):
    n_layers = len(params)
    for i, p in enumerate(params):
        in_c, out_c = x.shape[1], p["w"].shape[1]
        h = a_hat_f32 @ (x @ p["w"]) + p["b"]
        h = (h - p["running_mean"]) / jnp.sqrt(p["running_var"] + eps) \
            * p["gamma"] + p["beta"]
        if i > 0 and in_c == out_c:
            h = h + x
        if i < n_layers - 1:
            h = jnp.maximum(h, 0.0)
        x = h
    return x


def gcn_block_reference_bf16(x, a_hat_f32, params, eps=1e-5):
    """Matches the kernel's numerics (bf16 MXU operands, f32 accumulation)."""
    a_bf = a_hat_f32.astype(jnp.bfloat16)
    n_layers = len(params)
    for i, p in enumerate(params):
        in_c, out_c = x.shape[1], p["w"].shape[1]
        scale = p["gamma"] * jax.lax.rsqrt(p["running_var"] + eps)
        w_fold = (p["w"] * scale[None, :]).astype(jnp.bfloat16)
        shift = (p["b"] - p["running_mean"]) * scale + p["beta"]
        xw = jnp.dot(x.astype(jnp.bfloat16), w_fold,
                     preferred_element_type=jnp.float32).astype(jnp.bfloat16)
        h = jnp.dot(a_bf, xw, preferred_element_type=jnp.float32) + shift
        if i > 0 and in_c == out_c:
            h = h + x
        if i < n_layers - 1:
            h = jnp.maximum(h, 0.0)
        x = h
    return x


# ---------------------------------------------------------------------------
# Deterministic parameter init
# ---------------------------------------------------------------------------
def init_params(key, in_channels, hidden_channels, num_layers):
    params = []
    c_in = in_channels
    for _ in range(num_layers):
        c_out = hidden_channels
        key, k_w, k_b, k_g, k_be, k_m, k_v = jax.random.split(key, 7)
        limit = jnp.sqrt(6.0 / (c_in + c_out))  # glorot
        params.append(dict(
            w=jax.random.uniform(k_w, (c_in, c_out), jnp.float32, -limit, limit),
            b=0.1 * jax.random.normal(k_b, (c_out,), jnp.float32),
            gamma=1.0 + 0.1 * jax.random.normal(k_g, (c_out,), jnp.float32),
            beta=0.1 * jax.random.normal(k_be, (c_out,), jnp.float32),
            running_mean=0.1 * jax.random.normal(k_m, (c_out,), jnp.float32),
            running_var=1.0 + 0.1 * jax.random.uniform(k_v, (c_out,), jnp.float32),
        ))
        c_in = c_out
    return params


if __name__ == "__main__":
    key = jax.random.PRNGKey(0)
    num_nodes = 16
    in_channels = 8
    hidden_channels = 32
    num_layers = 2
    num_edges = 40

    key, k_x, k_src, k_dst, k_ew, k_p = jax.random.split(key, 6)
    x = jax.random.normal(k_x, (num_nodes, in_channels), jnp.float32)
    edge_index = jnp.stack([
        jax.random.randint(k_src, (num_edges,), 0, num_nodes),
        jax.random.randint(k_dst, (num_edges,), 0, num_nodes),
    ]).astype(jnp.int32)
    edge_weight = jax.random.uniform(k_ew, (num_edges,), jnp.float32, 0.1, 1.0)

    params = init_params(k_p, in_channels, hidden_channels, num_layers)

    out = gcn_block_forward(x, edge_index, edge_weight, params)
    out = jax.block_until_ready(out)
    assert out.shape == (num_nodes, hidden_channels)

    # Unpadded f32 adjacency for the references.
    n_pad, _ = _padded_dims(num_nodes)
    a_f32 = build_normalized_adjacency(
        edge_index, edge_weight, num_nodes, n_pad
    ).astype(jnp.float32)[:num_nodes, :num_nodes]

    # Tight check against a reference with matching bf16-operand numerics.
    ref_bf16 = gcn_block_reference_bf16(x, a_f32, params)
    assert np.allclose(np.asarray(out), np.asarray(ref_bf16),
                       rtol=2e-3, atol=2e-3)

    # Loose check against the full-f32 module semantics (bf16 MXU rounding).
    ref_f32 = gcn_block_reference_f32(x, a_f32, params)
    assert np.allclose(np.asarray(out), np.asarray(ref_f32),
                       rtol=5e-2, atol=5e-2)

    print("KERNEL_OK")
</pallas_src>

<mosaic_0001>
module attributes {stable_mosaic.version = 11 : i64} {
  func.func @_project_kernel(%arg0: i32, %arg1: memref<128x128xbf16, #tpu.memory_space<vmem>>, %arg2: memref<128x128xbf16, #tpu.memory_space<vmem>>, %arg3: memref<128x128xbf16, #tpu.memory_space<vmem>>) attributes {dimension_semantics = [#tpu.dimension_semantics<parallel>], iteration_bounds = array<i64: 1>, scalar_prefetch = 0 : i64, scratch_operands = 0 : i64, tpu.core_type = #tpu.core_type<tc>, window_params = [{transform_indices = @transform_0, window_bounds = array<i64: 128, 128>}, {pipeline_mode = #tpu.pipeline_mode<synchronous>, transform_indices = @transform_1, window_bounds = array<i64: 128, 128>}, {transform_indices = @transform_2, window_bounds = array<i64: 128, 128>}]} {
    %c0 = arith.constant 0 : index
    %c0_0 = arith.constant 0 : index
    %0 = vector.load %arg1[%c0, %c0_0] : memref<128x128xbf16, #tpu.memory_space<vmem>>, vector<128x128xbf16>
    %c0_1 = arith.constant 0 : index
    %c0_2 = arith.constant 0 : index
    %1 = vector.load %arg2[%c0_1, %c0_2] : memref<128x128xbf16, #tpu.memory_space<vmem>>, vector<128x128xbf16>
    %cst = arith.constant dense<0.000000e+00> : vector<128x128xf32>
    %2 = tpu.matmul %0, %1, %cst {dimension_numbers = #tpu.dot_dimension_numbers<[1], [0], [0], [1], [0, 0, 1, 1], [], []>} : vector<128x128xbf16>, vector<128x128xbf16>, vector<128x128xf32> -> vector<128x128xf32>
    %3 = arith.truncf %2 : vector<128x128xf32> to vector<128x128xbf16>
    %c0_3 = arith.constant 0 : index
    %c0_4 = arith.constant 0 : index
    %4 = vector.load %arg3[%c0_3, %c0_4] : memref<128x128xbf16, #tpu.memory_space<vmem>>, vector<128x128xbf16>
    tpu.vector_store %arg3[%c0_3, %c0_4], %3 {strides = array<i32>} : memref<128x128xbf16, #tpu.memory_space<vmem>>, vector<128x128xbf16>,
    return
  }
  func.func @transform_0(%arg0: i32) -> (i32, i32) {
    %c0_i32 = arith.constant 0 : i32
    %c0_i32_0 = arith.constant 0 : i32
    return %arg0, %c0_i32 : i32, i32
  }
  func.func @transform_1(%arg0: i32) -> (i32, i32) {
    %c0_i32 = arith.constant 0 : i32
    %c0_i32_0 = arith.constant 0 : i32
    %c0_i32_1 = arith.constant 0 : i32
    return %c0_i32, %c0_i32_0 : i32, i32
  }
  func.func @transform_2(%arg0: i32) -> (i32, i32) {
    %c0_i32 = arith.constant 0 : i32
    %c0_i32_0 = arith.constant 0 : i32
    return %arg0, %c0_i32 : i32, i32
  }
}

</mosaic_0001>

<bundles_post_ra>
// kernel: tpu_custom_call.1
= control target key start
LH: loop header
LB: loop body
LE: loop exit
PB: predicated region body
PF: predicated region fallthrough
CT: control target
= control target key end

     0   :  { %7 = vsyncpa [#allocation3], 0  ;;  %s648_s0 = inlined_call_operand.hbm [shape: bf16[128,128], index: 0, kind: input, shape index: {}]   ;;  %s649_s1 = inlined_call_operand.hbm [shape: bf16[128,128], index: 1, kind: input, shape index: {}]   ;;  %s650_s2 = inlined_call_operand.hbm [shape: bf16[128,128], index: 2, kind: output, shape index: {}]  }
   0x1   :  { %8 = vsyncpa [#allocation6], 0 }
   0x2   :  { %9 = vsyncpa [#allocation4], 0  ;;  %s610_s9 = smov [#allocation2]  }
   0x3   :  { %s15_s10 = sshll.u32 %s610_s9, 4  ;;  %s16_s10 = int_to_ptr.vmem [resolvable:$true] %s15_s10 }
   0x4   :  { %s552_s11 = scalar_lea.vmem %s16_s10, 1024  ;;  %p557_p1 = scmp.lt.s32.totalorder %s16_s10, %s16_s10 }
   0x5   :  { %p553_p0 = scmp.ne.s32.totalorder %s16_s10, %s552_s11  ;;  %p558_p2 = scmp.lt.s32.totalorder %s552_s11, %s552_s11 }
   0x7   :  { %p559_p3 = por %p558_p2, %p557_p1 }
   0x9   :  { %p560_p4 = pnand %p559_p3, %p553_p0 }
   0xb   :  { %563 = shalt.err (!%p560_p4)
}
   0xc   :  { %s611_s12 = smov 64   ;;  %s612_s13 = smov 4  }
   0xd   :  { %21 = dma.hbm_to_vmem [thread:$0]  %s648_s0, 1024, %s16_s10, [#allocation3], %s611_s12, %s611_s12, %s612_s13  }
   0xe   :  { %s613_s16 = smov [#allocation5]  }
   0xf   :  { %s27_s17 = sshll.u32 %s613_s16, 4  ;;  %s28_s17 = int_to_ptr.vmem [resolvable:$true] %s27_s17 }
  0x10   :  { %s572_s18 = scalar_lea.vmem %s28_s17, 1024  ;;  %p577_p6 = scmp.lt.s32.totalorder %s28_s17, %s28_s17 }
  0x11   :  { %p573_p5 = scmp.ne.s32.totalorder %s28_s17, %s572_s18  ;;  %p578_p7 = scmp.lt.s32.totalorder %s572_s18, %s572_s18 }
  0x13   :  { %p579_p8 = por %p578_p7, %p577_p6 }
  0x15   :  { %p580_p9 = pnand %p579_p8, %p573_p5 }
  0x17   :  { %583 = shalt.err (!%p580_p9)
}
  0x18   :  { %33 = dma.hbm_to_vmem [thread:$0]  %s649_s1, 1024, %s28_s17, [#allocation6], %s611_s12, %s611_s12, %s612_s13  }
  0x19   :  { %604 = dma.done.wait [#allocation3], 1024  }
  0x1a   :  { %605 = vsyncadd [#allocation3], 4294966272 }
  0x1b   :  { %606 = dma.done.wait [#allocation6], 1024  }
  0x1c   :  { %607 = vsyncadd [#allocation6], 4294966272  ;;  %v528_v0 = vld [vmem:[#allocation5 + $0x38] sm:$0xff]   ;;  %v529_v1 = vld [vmem:[#allocation5 + $0x30] sm:$0xff]   ;;  %s614_s0 = smov [#allocation7]  }
  0x1d   :  { %475 = vmatprep.subr.bf16.mxu0 %v528_v0  ;;  %507 = vmatprep.subr.bf16.mxu1 %v528_v0  ;;  %v530_v2 = vld [vmem:[#allocation5 + $0x28] sm:$0xff]   ;;  %v531_v3 = vld [vmem:[#allocation5 + $0x20] sm:$0xff]   ;;  %v532_v6 = vld [vmem:[#allocation5 + $0x18] sm:$0xff]   ;;  %s351_s1 = sshll.u32 %s614_s0, 4  ;;  %s352_s1 = int_to_ptr.vmem [resolvable:$true] %s351_s1 }
  0x1e   :  { %476 = vmatpush3.bf16.msra.mxu0 %v528_v0  ;;  %515 = vmatpush3.bf16.msra.mxu1 %v528_v0  ;;  %v536_v4 = vld [vmem:[#allocation2] sm:$0xff]   ;;  %v533_v7 = vld [vmem:[#allocation5 + $0x10] sm:$0xff]   ;;  %v534_v8 = vld [vmem:[#allocation5 + $0x8] sm:$0xff]   ;;  %s584_s21 = scalar_lea.vmem %s352_s1, 1024  ;;  %p589_p11 = scmp.lt.s32.totalorder %s352_s1, %s352_s1 }
  0x1f   :  { %477 = vmatprep.subr.bf16.mxu0 %v529_v1  ;;  %508 = vmatprep.subr.bf16.mxu1 %v529_v1  ;;  %v537_v5 = vld [vmem:[#allocation2 + $0x20] sm:$0xff]   ;;  %v538_v10 = vld [vmem:[#allocation2 + $0x8] sm:$0xff]   ;;  %v540_v12 = vld [vmem:[#allocation2 + $0x10] sm:$0xff]   ;;  %p585_p10 = scmp.ne.s32.totalorder %s352_s1, %s584_s21  ;;  %p590_p12 = scmp.lt.s32.totalorder %s584_s21, %s584_s21 }
  0x20   :  { %491 = vmatprep.mubr.bf16.mxu0 %v536_v4  ;;  %499 = vmatprep.mubr.bf16.mxu1 %v537_v5  ;;  %v535_v9 = vld [vmem:[#allocation5] sm:$0xff]   ;;  %v539_v11 = vld [vmem:[#allocation2 + $0x28] sm:$0xff]   ;;  %v541_v13 = vld [vmem:[#allocation2 + $0x30] sm:$0xff]  }
  0x21   :  { %v542_v14 = vld [vmem:[#allocation2 + $0x18] sm:$0xff]   ;;  %p591_p13 = por %p590_p12, %p589_p11 }
  0x22   :  { %478 = vmatpush3.bf16.msra.mxu0 %v529_v1  ;;  %516 = vmatpush3.bf16.msra.mxu1 %v529_v1  ;;  %v543_v15 = vld [vmem:[#allocation2 + $0x38] sm:$0xff]  }
  0x23   :  { %479 = vmatprep.subr.bf16.mxu0 %v530_v2  ;;  %509 = vmatprep.subr.bf16.mxu1 %v530_v2  ;;  %p592_p0 = pnand %p591_p13, %p585_p10 }
  0x26   :  { %480 = vmatpush3.bf16.msra.mxu0 %v530_v2  ;;  %517 = vmatpush3.bf16.msra.mxu1 %v530_v2 }
  0x27   :  { %481 = vmatprep.subr.bf16.mxu0 %v531_v3  ;;  %510 = vmatprep.subr.bf16.mxu1 %v531_v3 }
  0x2a   :  { %482 = vmatpush3.bf16.msra.mxu0 %v531_v3  ;;  %518 = vmatpush3.bf16.msra.mxu1 %v531_v3 }
  0x2b   :  { %483 = vmatprep.subr.bf16.mxu0 %v532_v6  ;;  %511 = vmatprep.subr.bf16.mxu1 %v532_v6 }
  0x2e   :  { %484 = vmatpush3.bf16.msra.mxu0 %v532_v6  ;;  %519 = vmatpush3.bf16.msra.mxu1 %v532_v6 }
  0x2f   :  { %485 = vmatprep.subr.bf16.mxu0 %v533_v7  ;;  %512 = vmatprep.subr.bf16.mxu1 %v533_v7 }
  0x32   :  { %486 = vmatpush3.bf16.msra.mxu0 %v533_v7  ;;  %520 = vmatpush3.bf16.msra.mxu1 %v533_v7 }
  0x33   :  { %487 = vmatprep.subr.bf16.mxu0 %v534_v8  ;;  %513 = vmatprep.subr.bf16.mxu1 %v534_v8 }
  0x36   :  { %488 = vmatpush3.bf16.msra.mxu0 %v534_v8  ;;  %521 = vmatpush3.bf16.msra.mxu1 %v534_v8 }
  0x37   :  { %489 = vmatprep.subr.bf16.mxu0 %v535_v9  ;;  %514 = vmatprep.subr.bf16.mxu1 %v535_v9 }
  0x3a   :  { %490 = vmatpush3.bf16.msra.mxu0 %v535_v9  ;;  %522 = vmatpush3.bf16.msra.mxu1 %v535_v9 }
  0x3d   :  { %492 = vmatmul.mubr.bf16.vlgmr.msra.gmra.mxu0 %v538_v10  ;;  %500 = vmatmul.mubr.bf16.vlgmr.msra.gmra.mxu1 %v539_v11 }
  0x3e   :  { %495 = vmatprep.mubr.bf16.mxu0 %v540_v12  ;;  %503 = vmatprep.mubr.bf16.mxu1 %v541_v13 }
  0x45   :  { %496 = vmatmul.mubr.bf16.gmra.mxu0 %v542_v14  ;;  %504 = vmatmul.mubr.bf16.gmra.mxu1 %v543_v15 }
  0xfd   :  { %v493_v16 = vpop.f32.mrf.mxu0  ;;  %v501_v17 = vpop.f32.mrf.mxu1 }
  0xff   :  { %v203_v18 = vpop.f32.mrf.mxu0  ;;  %v235_v19 = vpop.f32.mrf.mxu1 }
 0x101   :  { %v494_v20 = vpop.f32.mrf.mxu0  ;;  %v502_v21 = vpop.f32.mrf.mxu1 }
 0x102   :  { %v420_v22 = vpack.c.bf16 %v494_v20, %v493_v16  ;;  %v440_v23 = vpack.c.bf16 %v502_v21, %v501_v17 }
 0x103   :  { %v206_v24 = vpop.f32.mrf.mxu0  ;;  %v238_v25 = vpop.f32.mrf.mxu1 }
 0x104   :  { %452 = vst [vmem:[#allocation7 + $0x8] sm:$0xff] %v420_v22   ;;  %456 = vst [vmem:[#allocation7 + $0x28] sm:$0xff] %v440_v23   ;;  %v415_v26 = vpack.c.bf16 %v206_v24, %v203_v18  ;;  %v435_v27 = vpack.c.bf16 %v238_v25, %v235_v19 }
 0x105   :  { %v497_v28 = vpop.f32.mrf.mxu0  ;;  %v505_v29 = vpop.f32.mrf.mxu1 }
 0x106   :  { %416 = vst [vmem:[#allocation7] sm:$0xff] %v415_v26   ;;  %455 = vst [vmem:[#allocation7 + $0x20] sm:$0xff] %v435_v27  }
 0x107   :  { %v219_v30 = vpop.f32.mrf.mxu0  ;;  %v251_v31 = vpop.f32.mrf.mxu1 }
 0x109   :  { %v498_v32 = vpop.f32.mrf.mxu0  ;;  %v506_v33 = vpop.f32.mrf.mxu1 }
 0x10a   :  { %v430_v34 = vpack.c.bf16 %v498_v32, %v497_v28  ;;  %v450_v35 = vpack.c.bf16 %v506_v33, %v505_v29 }
 0x10b   :  { %v222_v36 = vpop.f32.mrf.mxu0  ;;  %v254_v37 = vpop.f32.mrf.mxu1 }
 0x10c   :  { %454 = vst [vmem:[#allocation7 + $0x18] sm:$0xff] %v430_v34   ;;  %458 = vst [vmem:[#allocation7 + $0x38] sm:$0xff] %v450_v35   ;;  %v425_v38 = vpack.c.bf16 %v222_v36, %v219_v30  ;;  %v445_v39 = vpack.c.bf16 %v254_v37, %v251_v31 }
 0x10e   :  { %453 = vst [vmem:[#allocation7 + $0x10] sm:$0xff] %v425_v38   ;;  %457 = vst [vmem:[#allocation7 + $0x30] sm:$0xff] %v445_v39  }
 0x10f   :  { %595 = shalt.err (!%p592_p0)
}
 0x110   :  { %357 = dma.vmem_to_hbm [thread:$0]  %s352_s1, 1024, %s650_s2, [#allocation4], %s611_s12, %s611_s12, %s612_s13  }
 0x111   :  { %608 = dma.done.wait [#allocation4], 1024  }
 0x112   :  { %609 = vsyncadd [#allocation4], 4294966272 }
 0x113   :  { %361 = vsyncpa [#allocation3], 1 }
 0x114   :  { %362 = vsyncpa [#allocation6], 1 }
 0x115   :  { %363 = vsyncpa [#allocation4], 1 }

</bundles_post_ra>
